<compile_context>
chip_gen: v6e
topology: v6e:2x2x1
jax: 0.10.0
libtpu: 0.0.40
codegen_flags: <defaults>
</compile_context>

<pallas_src>
import functools

import numpy as np

import jax
import jax.numpy as jnp
from jax import lax
from jax.experimental import pallas as pl
from jax.experimental.pallas import tpu as pltpu


# ----------------------------------------------------------------------------
# Kernel
# ----------------------------------------------------------------------------
def _double_conv_kernel(x_ref, w1_ref, b1_ref, w2_ref, b2_ref, m_ref, o_ref,
                        *, W, R):
    bf16 = jnp.bfloat16
    Lx = x_ref.shape[-1]                       # (R + 4) * W  (band + halo)

    band = pl.program_id(1)
    nbands = pl.num_programs(1)

    keep_l = m_ref[0]                          # (1, Lx) bf16: zero last column   (dw = -1 source)
    keep_r = m_ref[1]                          # (1, Lx) bf16: zero first column  (dw = +1 source)
    top_halo = m_ref[2]                        # (1, Lx) bf16: 1.0 on band row 1
    bot_halo = m_ref[3]                        # (1, Lx) bf16: 1.0 on band row R+2

    def shift(v, d):
        # shifted[c, p] = v[c, p + d], zero-filled outside the band buffer.
        if d == 0:
            return v
        c = v.shape[0]
        if d > 0:
            return jnp.concatenate([v[:, d:], jnp.zeros((c, d), v.dtype)], axis=1)
        return jnp.concatenate([jnp.zeros((c, -d), v.dtype), v[:, :Lx + d]], axis=1)

    def conv3x3_bias_relu(v, w_r, b_r):
        # v: (C_p, Lx) bf16 -> f32 (C_out, Lx); band rows 1..R+2 are exact.
        vl = v * keep_l                        # source for dw = -1 taps
        vr = v * keep_r                        # source for dw = +1 taps
        taps = []
        for dh in (-1, 0, 1):
            base = dh * W
            taps.append(shift(vl, base - 1))   # (dh, -1)
            taps.append(shift(v, base))        # (dh,  0)
            taps.append(shift(vr, base + 1))   # (dh, +1)
        stacked = jnp.concatenate(taps, axis=0)          # (9*C_p, Lx) bf16
        acc = jnp.dot(w_r[...], stacked,
                      preferred_element_type=jnp.float32)  # MXU, f32 accumulate
        return jnp.maximum(acc + b_r[...], 0.0)             # folded BN bias + ReLU

    x = x_ref[...]                                          # (Cin_p, Lx) bf16
    mid = conv3x3_bias_relu(x, w1_ref, b1_ref)              # (Cmid_p, Lx) f32

    # conv2's zero padding: mid rows that fall OUTSIDE the original image
    # (top halo row of the first band / bottom halo row of the last band)
    # must be exactly zero, not "conv1 evaluated outside the image".
    drop = (jnp.where(band == 0, top_halo, jnp.zeros_like(top_halo))
            + jnp.where(band == nbands - 1, bot_halo, jnp.zeros_like(bot_halo)))
    keep_rows = (1.0 - drop).astype(jnp.float32)            # (1, Lx)
    mid = (mid * keep_rows).astype(jnp.bfloat16)            # stays in VMEM only

    out = conv3x3_bias_relu(mid, w2_ref, b2_ref)            # (Cout, Lx) f32
    # Keep band rows 2 .. R+1 == the R original output rows of this band.
    o_ref[...] = out[:, 2 * W:(2 + R) * W].astype(o_ref.dtype)


# ----------------------------------------------------------------------------
# Wrapper helpers
# ----------------------------------------------------------------------------
def _round_up(x, m):
    return ((x + m - 1) // m) * m


def _fold_bn(w, b, bn, eps):
    """Fold inference BatchNorm into the conv: BN(conv(x)+b) == (s*W)(*)x + bias."""
    f32 = jnp.float32
    gamma, beta, mean, var = (t.astype(f32) for t in bn)
    s = gamma * lax.rsqrt(var + eps)
    w_folded = w.astype(f32) * s[:, None, None, None]
    bias = s * (b.astype(f32) - mean) + beta
    return w_folded, bias


def _pack_taps(w_folded, cout_pad, cin_pad):
    """(Cout, Cin, 3, 3) f32 -> (cout_pad, 9*cin_pad) bf16, K index
    (kh*3 + kw)*cin_pad + cin matching the in-kernel tap stacking order."""
    cout, cin = w_folded.shape[:2]
    w_full = jnp.zeros((cout_pad, cin_pad, 3, 3), jnp.float32)
    w_full = w_full.at[:cout, :cin].set(w_folded)
    return (w_full.transpose(0, 2, 3, 1)
            .reshape(cout_pad, 9 * cin_pad).astype(jnp.bfloat16))


def _estimate_step_vmem_bytes(R, W, cin_p, cmid_p, cout):
    lx = (R + 4) * W
    c_big = max(cin_p, cmid_p)
    b = 0
    b += 2 * cin_p * lx * 2                                   # x band (double buffered, bf16)
    b += 2 * cout * R * W * 4                                 # out band (double buffered)
    b += 2 * 2 * (cmid_p * 9 * cin_p + cout * 9 * cmid_p)     # weights (bf16, double buffered)
    b += 9 * c_big * lx * 2                                   # stacked taps
    b += 2 * c_big * lx * 2                                   # masked source copies
    b += cmid_p * lx * (4 + 2)                                # mid f32 + bf16
    b += max(cmid_p, cout) * lx * 4                           # conv accumulator
    return int(1.5 * b)                                       # relayout headroom


def _choose_rows_per_band(H, W, cin_p, cmid_p, cout,
                          vmem_budget_bytes=20 * 1024 * 1024):
    cands = [r for r in range(1, H + 1)
             if H % r == 0 and (r == H or (r * W) % 128 == 0)]
    fitting = [r for r in cands
               if _estimate_step_vmem_bytes(r, W, cin_p, cmid_p, cout)
               <= vmem_budget_bytes]
    return max(fitting) if fitting else min(cands)


# ----------------------------------------------------------------------------
# Public entry point
# ----------------------------------------------------------------------------
def double_conv_pallas(x, w1, b1, bn1, w2, b2, bn2, *, eps=1e-5,
                       rows_per_band=None):
    """DoubleConv forward.

    x:   (N, Cin, H, W)  NCHW
    w1:  (Cmid, Cin, 3, 3), b1: (Cmid,), bn1: (gamma, beta, mean, var) each (Cmid,)
    w2:  (Cout, Cmid, 3, 3), b2: (Cout,), bn2: (gamma, beta, mean, var) each (Cout,)
    returns (N, Cout, H, W)
    """
    N, Cin, H, W = x.shape
    Cmid = w1.shape[0]
    Cout = w2.shape[0]
    f32, bf16 = jnp.float32, jnp.bfloat16

    # bf16 sublane-tile alignment for the stacked-tap K axis.
    Cin_p = _round_up(Cin, 16)
    Cmid_p = _round_up(Cmid, 16)

    w1_folded, bias1 = _fold_bn(w1, b1, bn1, eps)
    w2_folded, bias2 = _fold_bn(w2, b2, bn2, eps)
    w1_packed = _pack_taps(w1_folded, Cmid_p, Cin_p)     # (Cmid_p, 9*Cin_p) bf16
    w2_packed = _pack_taps(w2_folded, Cout, Cmid_p)      # (Cout, 9*Cmid_p)  bf16
    bias1_col = jnp.zeros((Cmid_p, 1), f32).at[:Cmid, 0].set(bias1)
    bias2_col = bias2.reshape(Cout, 1)

    # Row-band tiling.
    if rows_per_band is None:
        R = _choose_rows_per_band(H, W, Cin_p, Cmid_p, Cout)
    else:
        R = int(rows_per_band)
    if H % R != 0:
        raise ValueError(f"rows_per_band={R} must divide H={H}")
    NB = H // R
    if NB > 1 and (R * W) % 128 != 0:
        raise ValueError("multi-band tiling requires rows_per_band * W % 128 == 0")
    Rx = R + 4
    Lx = Rx * W

    # Banded input: 2 zero halo rows top/bottom (fused 2-conv receptive
    # field), channels zero-padded to Cin_p, and each band slab carries its
    # own halo so every kernel block is self-contained.
    x_pad = jnp.pad(x.astype(bf16),
                    ((0, 0), (0, Cin_p - Cin), (2, 2), (0, 0)))
    x_bands = jnp.stack(
        [x_pad[:, :, b * R: b * R + Rx, :] for b in range(NB)],
        axis=1).reshape(N, NB, Cin_p, Lx)

    # Lane masks (tiny, resident across the whole grid).
    lane = np.arange(Lx)
    col = lane % W
    row = lane // W
    masks_np = np.stack([
        (col != W - 1),     # keep for dw = -1 source
        (col != 0),         # keep for dw = +1 source
        (row == 1),         # top mid-halo row    (zeroed when band == 0)
        (row == R + 2),     # bottom mid-halo row (zeroed when band == NB-1)
    ]).astype(np.float32)
    masks = jnp.asarray(masks_np, dtype=bf16).reshape(4, 1, Lx)

    kernel = functools.partial(_double_conv_kernel, W=W, R=R)

    out_flat = pl.pallas_call(
        kernel,
        out_shape=jax.ShapeDtypeStruct((N, Cout, H * W), x.dtype),
        grid_spec=pltpu.PrefetchScalarGridSpec(
            num_scalar_prefetch=0,
            grid=(N, NB),
            in_specs=[
                pl.BlockSpec((None, None, Cin_p, Lx), lambda n, b: (n, b, 0, 0)),
                pl.BlockSpec((Cmid_p, 9 * Cin_p), lambda n, b: (0, 0)),
                pl.BlockSpec((Cmid_p, 1), lambda n, b: (0, 0)),
                pl.BlockSpec((Cout, 9 * Cmid_p), lambda n, b: (0, 0)),
                pl.BlockSpec((Cout, 1), lambda n, b: (0, 0)),
                pl.BlockSpec((4, 1, Lx), lambda n, b: (0, 0, 0)),
            ],
            out_specs=pl.BlockSpec((None, Cout, R * W), lambda n, b: (n, 0, b)),
        ),
        compiler_params=pltpu.CompilerParams(
            dimension_semantics=("parallel", "parallel"),
            vmem_limit_bytes=48 * 1024 * 1024,
        ),
    )(x_bands, w1_packed, bias1_col, w2_packed, bias2_col, masks)

    return out_flat.reshape(N, Cout, H, W)


# ----------------------------------------------------------------------------
# References
# ----------------------------------------------------------------------------
def reference_double_conv(x, w1, b1, bn1, w2, b2, bn2, eps=1e-5):
    """Pure f32 JAX reference (inference-mode BN), matching the PyTorch module."""
    def conv(inp, w, b):
        y = lax.conv_general_dilated(
            inp.astype(jnp.float32), w.astype(jnp.float32),
            window_strides=(1, 1), padding=((1, 1), (1, 1)),
            dimension_numbers=("NCHW", "OIHW", "NCHW"),
            precision=lax.Precision.HIGHEST)
        return y + b[None, :, None, None]

    def bn(y, params):
        g, be, mu, v = params
        s = g / jnp.sqrt(v + eps)
        return y * s[None, :, None, None] + (be - mu * s)[None, :, None, None]

    h = jax.nn.relu(bn(conv(x, w1, b1), bn1))
    return jax.nn.relu(bn(conv(h, w2, b2), bn2))


def reference_double_conv_bf16(x, w1, b1, bn1, w2, b2, bn2, eps=1e-5):
    """Reference with the kernel's quantization: bf16 operands, f32 accumulate."""
    f32, bf16 = jnp.float32, jnp.bfloat16

    def conv_relu(inp_bf16, w_bf16, bias):
        y = lax.conv_general_dilated(
            inp_bf16.astype(f32), w_bf16.astype(f32),
            window_strides=(1, 1), padding=((1, 1), (1, 1)),
            dimension_numbers=("NCHW", "OIHW", "NCHW"),
            precision=lax.Precision.HIGHEST)
        return jax.nn.relu(y + bias[None, :, None, None])

    w1f, bias1 = _fold_bn(w1, b1, bn1, eps)
    w2f, bias2 = _fold_bn(w2, b2, bn2, eps)
    h = conv_relu(x.astype(bf16), w1f.astype(bf16), bias1).astype(bf16)
    return conv_relu(h, w2f.astype(bf16), bias2)


# ----------------------------------------------------------------------------
# Self-test
# ----------------------------------------------------------------------------
if __name__ == "__main__":
    key = jax.random.PRNGKey(0)

    def conv_init(kw, kb, cout, cin):
        fan_in = cin * 9
        bound = 1.0 / (fan_in ** 0.5)
        w = jax.random.uniform(kw, (cout, cin, 3, 3),
                               minval=-bound, maxval=bound, dtype=jnp.float32)
        b = jax.random.uniform(kb, (cout,),
                               minval=-bound, maxval=bound, dtype=jnp.float32)
        return w, b

    def bn_init(kg, kb, km, kv, c):
        gamma = 1.0 + 0.1 * jax.random.normal(kg, (c,), dtype=jnp.float32)
        beta = 0.1 * jax.random.normal(kb, (c,), dtype=jnp.float32)
        mean = 0.1 * jax.random.normal(km, (c,), dtype=jnp.float32)
        var = jax.random.uniform(kv, (c,), minval=0.5, maxval=1.5,
                                 dtype=jnp.float32)
        return gamma, beta, mean, var

    configs = [
        # (N, Cin, Cmid, Cout, H, W, rows_per_band)
        (2, 4, 4, 4, 16, 16, 8),      # multi-band: exercises the halo path
        (1, 3, 6, 5, 12, 20, None),   # odd channels / W, auto band choice
    ]

    for idx, (N, Cin, Cmid, Cout, H, W, rpb) in enumerate(configs):
        key, *ks = jax.random.split(key, 14)
        x = jax.random.normal(ks[0], (N, Cin, H, W), dtype=jnp.float32)
        w1, b1 = conv_init(ks[1], ks[2], Cmid, Cin)
        w2, b2 = conv_init(ks[3], ks[4], Cout, Cmid)
        bn1 = bn_init(ks[5], ks[6], ks[7], ks[8], Cmid)
        bn2 = bn_init(ks[9], ks[10], ks[11], ks[12], Cout)

        out = double_conv_pallas(x, w1, b1, bn1, w2, b2, bn2, rows_per_band=rpb)
        out = jax.block_until_ready(out)
        assert out.shape == (N, Cout, H, W), out.shape

        # Tight check against a quantization-matched reference.
        ref_q = reference_double_conv_bf16(x, w1, b1, bn1, w2, b2, bn2)
        err_q = float(jnp.max(jnp.abs(out - ref_q)))
        assert jnp.allclose(out, ref_q, atol=1e-2, rtol=1e-2), (idx, err_q)

        # Loose semantic check against the pure-f32 reference.
        ref32 = reference_double_conv(x, w1, b1, bn1, w2, b2, bn2)
        rel = float(jnp.linalg.norm(out - ref32)
                    / (jnp.linalg.norm(ref32) + 1e-12))
        assert rel < 0.05, (idx, rel)

    print("KERNEL_OK")
</pallas_src>

<mosaic_0001>
module attributes {stable_mosaic.version = 11 : i64} {
  func.func @_double_conv_kernel(%arg0: i32, %arg1: i32, %arg2: memref<1x1x16x192xbf16, #tpu.memory_space<vmem>>, %arg3: memref<16x144xbf16, #tpu.memory_space<vmem>>, %arg4: memref<16x1xf32, #tpu.memory_space<vmem>>, %arg5: memref<4x144xbf16, #tpu.memory_space<vmem>>, %arg6: memref<4x1xf32, #tpu.memory_space<vmem>>, %arg7: memref<4x1x192xbf16, #tpu.memory_space<vmem>>, %arg8: memref<1x4x128xf32, #tpu.memory_space<vmem>>) attributes {dimension_semantics = [#tpu.dimension_semantics<parallel>, #tpu.dimension_semantics<parallel>], iteration_bounds = array<i64: 2, 2>, scalar_prefetch = 0 : i64, scratch_operands = 0 : i64, tpu.core_type = #tpu.core_type<tc>, window_params = [{transform_indices = @transform_0, window_bounds = array<i64: 1, 1, 16, 192>}, {pipeline_mode = #tpu.pipeline_mode<synchronous>, transform_indices = @transform_1, window_bounds = array<i64: 16, 144>}, {pipeline_mode = #tpu.pipeline_mode<synchronous>, transform_indices = @transform_2, window_bounds = array<i64: 16, 1>}, {pipeline_mode = #tpu.pipeline_mode<synchronous>, transform_indices = @transform_3, window_bounds = array<i64: 4, 144>}, {pipeline_mode = #tpu.pipeline_mode<synchronous>, transform_indices = @transform_4, window_bounds = array<i64: 4, 1>}, {pipeline_mode = #tpu.pipeline_mode<synchronous>, transform_indices = @transform_5, window_bounds = array<i64: 4, 1, 192>}, {transform_indices = @transform_6, window_bounds = array<i64: 1, 4, 128>}]} {
    %c0 = arith.constant 0 : index
    %c0_0 = arith.constant 0 : index
    %c0_1 = arith.constant 0 : index
    %0 = vector.load %arg7[%c0, %c0_0, %c0_1] : memref<4x1x192xbf16, #tpu.memory_space<vmem>>, vector<1x1x192xbf16>
    %1 = vector.shape_cast %0 : vector<1x1x192xbf16> to vector<1x192xbf16>
    %c1 = arith.constant 1 : index
    %c0_2 = arith.constant 0 : index
    %c0_3 = arith.constant 0 : index
    %2 = vector.load %arg7[%c1, %c0_2, %c0_3] : memref<4x1x192xbf16, #tpu.memory_space<vmem>>, vector<1x1x192xbf16>
    %3 = vector.shape_cast %2 : vector<1x1x192xbf16> to vector<1x192xbf16>
    %c2 = arith.constant 2 : index
    %c0_4 = arith.constant 0 : index
    %c0_5 = arith.constant 0 : index
    %4 = vector.load %arg7[%c2, %c0_4, %c0_5] : memref<4x1x192xbf16, #tpu.memory_space<vmem>>, vector<1x1x192xbf16>
    %5 = vector.shape_cast %4 : vector<1x1x192xbf16> to vector<1x192xbf16>
    %c3 = arith.constant 3 : index
    %c0_6 = arith.constant 0 : index
    %c0_7 = arith.constant 0 : index
    %6 = vector.load %arg7[%c3, %c0_6, %c0_7] : memref<4x1x192xbf16, #tpu.memory_space<vmem>>, vector<1x1x192xbf16>
    %7 = vector.shape_cast %6 : vector<1x1x192xbf16> to vector<1x192xbf16>
    %c0_8 = arith.constant 0 : index
    %c0_9 = arith.constant 0 : index
    %c0_10 = arith.constant 0 : index
    %c0_11 = arith.constant 0 : index
    %8 = vector.load %arg2[%c0_8, %c0_9, %c0_10, %c0_11] : memref<1x1x16x192xbf16, #tpu.memory_space<vmem>>, vector<1x1x16x192xbf16>
    %9 = vector.shape_cast %8 : vector<1x1x16x192xbf16> to vector<16x192xbf16>
    %10 = vector.broadcast %1 : vector<1x192xbf16> to vector<16x192xbf16>
    %11 = arith.mulf %9, %10 : vector<16x192xbf16>
    %12 = vector.broadcast %3 : vector<1x192xbf16> to vector<16x192xbf16>
    %13 = arith.mulf %9, %12 : vector<16x192xbf16>
    %cst = arith.constant 0.000000e+00 : bf16
    %14 = vector.broadcast %cst : bf16 to vector<16x17xbf16>
    %15 = vector.extract_strided_slice %11 {offsets = [0, 0], sizes = [16, 175], strides = [1, 1]} : vector<16x192xbf16> to vector<16x175xbf16>
    %16 = tpu.concatenate %14, %15 in 1 : vector<16x17xbf16>, vector<16x175xbf16> -> vector<16x192xbf16>
    %cst_12 = arith.constant 0.000000e+00 : bf16
    %17 = vector.broadcast %cst_12 : bf16 to vector<16x16xbf16>
    %18 = vector.extract_strided_slice %9 {offsets = [0, 0], sizes = [16, 176], strides = [1, 1]} : vector<16x192xbf16> to vector<16x176xbf16>
    %19 = tpu.concatenate %17, %18 in 1 : vector<16x16xbf16>, vector<16x176xbf16> -> vector<16x192xbf16>
    %cst_13 = arith.constant 0.000000e+00 : bf16
    %20 = vector.broadcast %cst_13 : bf16 to vector<16x15xbf16>
    %21 = vector.extract_strided_slice %13 {offsets = [0, 0], sizes = [16, 177], strides = [1, 1]} : vector<16x192xbf16> to vector<16x177xbf16>
    %22 = tpu.concatenate %20, %21 in 1 : vector<16x15xbf16>, vector<16x177xbf16> -> vector<16x192xbf16>
    %cst_14 = arith.constant 0.000000e+00 : bf16
    %23 = vector.broadcast %cst_14 : bf16 to vector<16x1xbf16>
    %24 = vector.extract_strided_slice %11 {offsets = [0, 0], sizes = [16, 191], strides = [1, 1]} : vector<16x192xbf16> to vector<16x191xbf16>
    %25 = tpu.concatenate %23, %24 in 1 : vector<16x1xbf16>, vector<16x191xbf16> -> vector<16x192xbf16>
    %26 = vector.extract_strided_slice %13 {offsets = [0, 1], sizes = [16, 191], strides = [1, 1]} : vector<16x192xbf16> to vector<16x191xbf16>
    %cst_15 = arith.constant 0.000000e+00 : bf16
    %27 = vector.broadcast %cst_15 : bf16 to vector<16x1xbf16>
    %28 = tpu.concatenate %26, %27 in 1 : vector<16x191xbf16>, vector<16x1xbf16> -> vector<16x192xbf16>
    %29 = vector.extract_strided_slice %11 {offsets = [0, 15], sizes = [16, 177], strides = [1, 1]} : vector<16x192xbf16> to vector<16x177xbf16>
    %cst_16 = arith.constant 0.000000e+00 : bf16
    %30 = vector.broadcast %cst_16 : bf16 to vector<16x15xbf16>
    %31 = tpu.concatenate %29, %30 in 1 : vector<16x177xbf16>, vector<16x15xbf16> -> vector<16x192xbf16>
    %32 = vector.extract_strided_slice %9 {offsets = [0, 16], sizes = [16, 176], strides = [1, 1]} : vector<16x192xbf16> to vector<16x176xbf16>
    %cst_17 = arith.constant 0.000000e+00 : bf16
    %33 = vector.broadcast %cst_17 : bf16 to vector<16x16xbf16>
    %34 = tpu.concatenate %32, %33 in 1 : vector<16x176xbf16>, vector<16x16xbf16> -> vector<16x192xbf16>
    %35 = vector.extract_strided_slice %13 {offsets = [0, 17], sizes = [16, 175], strides = [1, 1]} : vector<16x192xbf16> to vector<16x175xbf16>
    %cst_18 = arith.constant 0.000000e+00 : bf16
    %36 = vector.broadcast %cst_18 : bf16 to vector<16x17xbf16>
    %37 = tpu.concatenate %35, %36 in 1 : vector<16x175xbf16>, vector<16x17xbf16> -> vector<16x192xbf16>
    %38 = tpu.concatenate %16, %19, %22, %25, %9, %28, %31, %34, %37 in 0 : vector<16x192xbf16>, vector<16x192xbf16>, vector<16x192xbf16>, vector<16x192xbf16>, vector<16x192xbf16>, vector<16x192xbf16>, vector<16x192xbf16>, vector<16x192xbf16>, vector<16x192xbf16> -> vector<144x192xbf16>
    %c0_19 = arith.constant 0 : index
    %c0_20 = arith.constant 0 : index
    %39 = vector.load %arg3[%c0_19, %c0_20] : memref<16x144xbf16, #tpu.memory_space<vmem>>, vector<16x144xbf16>
    %cst_21 = arith.constant dense<0.000000e+00> : vector<16x192xf32>
    %40 = tpu.matmul %39, %38, %cst_21 {dimension_numbers = #tpu.dot_dimension_numbers<[1], [0], [0], [1], [0, 0, 1, 1], [], []>} : vector<16x144xbf16>, vector<144x192xbf16>, vector<16x192xf32> -> vector<16x192xf32>
    %c0_22 = arith.constant 0 : index
    %c0_23 = arith.constant 0 : index
    %41 = vector.load %arg4[%c0_22, %c0_23] : memref<16x1xf32, #tpu.memory_space<vmem>>, vector<16x1xf32>
    %42 = vector.broadcast %41 : vector<16x1xf32> to vector<16x192xf32>
    %43 = arith.addf %40, %42 : vector<16x192xf32>
    %cst_24 = arith.constant 0.000000e+00 : f32
    %44 = vector.broadcast %cst_24 : f32 to vector<16x192xf32>
    %45 = arith.maximumf %43, %44 : vector<16x192xf32>
    %c0_i32 = arith.constant 0 : i32
    %46 = arith.cmpi eq, %arg1, %c0_i32 : i32
    %cst_25 = arith.constant 0.000000e+00 : bf16
    %47 = vector.broadcast %cst_25 : bf16 to vector<1x192xbf16>
    %48 = arith.select %46, %5, %47 : vector<1x192xbf16>
    %c1_i32 = arith.constant 1 : i32
    %49 = arith.cmpi eq, %arg1, %c1_i32 : i32
    %cst_26 = arith.constant 0.000000e+00 : bf16
    %50 = vector.broadcast %cst_26 : bf16 to vector<1x192xbf16>
    %51 = arith.select %49, %7, %50 : vector<1x192xbf16>
    %52 = arith.addf %48, %51 : vector<1x192xbf16>
    %cst_27 = arith.constant 1.000000e+00 : bf16
    %53 = vector.broadcast %cst_27 : bf16 to vector<1x192xbf16>
    %54 = arith.subf %53, %52 : vector<1x192xbf16>
    %55 = arith.extf %54 : vector<1x192xbf16> to vector<1x192xf32>
    %56 = vector.broadcast %55 : vector<1x192xf32> to vector<16x192xf32>
    %57 = arith.mulf %45, %56 : vector<16x192xf32>
    %58 = arith.truncf %57 : vector<16x192xf32> to vector<16x192xbf16>
    %59 = vector.broadcast %1 : vector<1x192xbf16> to vector<16x192xbf16>
    %60 = arith.mulf %58, %59 : vector<16x192xbf16>
    %61 = vector.broadcast %3 : vector<1x192xbf16> to vector<16x192xbf16>
    %62 = arith.mulf %58, %61 : vector<16x192xbf16>
    %cst_28 = arith.constant 0.000000e+00 : bf16
    %63 = vector.broadcast %cst_28 : bf16 to vector<16x17xbf16>
    %64 = vector.extract_strided_slice %60 {offsets = [0, 0], sizes = [16, 175], strides = [1, 1]} : vector<16x192xbf16> to vector<16x175xbf16>
    %65 = tpu.concatenate %63, %64 in 1 : vector<16x17xbf16>, vector<16x175xbf16> -> vector<16x192xbf16>
    %cst_29 = arith.constant 0.000000e+00 : bf16
    %66 = vector.broadcast %cst_29 : bf16 to vector<16x16xbf16>
    %67 = vector.extract_strided_slice %58 {offsets = [0, 0], sizes = [16, 176], strides = [1, 1]} : vector<16x192xbf16> to vector<16x176xbf16>
    %68 = tpu.concatenate %66, %67 in 1 : vector<16x16xbf16>, vector<16x176xbf16> -> vector<16x192xbf16>
    %cst_30 = arith.constant 0.000000e+00 : bf16
    %69 = vector.broadcast %cst_30 : bf16 to vector<16x15xbf16>
    %70 = vector.extract_strided_slice %62 {offsets = [0, 0], sizes = [16, 177], strides = [1, 1]} : vector<16x192xbf16> to vector<16x177xbf16>
    %71 = tpu.concatenate %69, %70 in 1 : vector<16x15xbf16>, vector<16x177xbf16> -> vector<16x192xbf16>
    %cst_31 = arith.constant 0.000000e+00 : bf16
    %72 = vector.broadcast %cst_31 : bf16 to vector<16x1xbf16>
    %73 = vector.extract_strided_slice %60 {offsets = [0, 0], sizes = [16, 191], strides = [1, 1]} : vector<16x192xbf16> to vector<16x191xbf16>
    %74 = tpu.concatenate %72, %73 in 1 : vector<16x1xbf16>, vector<16x191xbf16> -> vector<16x192xbf16>
    %75 = vector.extract_strided_slice %62 {offsets = [0, 1], sizes = [16, 191], strides = [1, 1]} : vector<16x192xbf16> to vector<16x191xbf16>
    %cst_32 = arith.constant 0.000000e+00 : bf16
    %76 = vector.broadcast %cst_32 : bf16 to vector<16x1xbf16>
    %77 = tpu.concatenate %75, %76 in 1 : vector<16x191xbf16>, vector<16x1xbf16> -> vector<16x192xbf16>
    %78 = vector.extract_strided_slice %60 {offsets = [0, 15], sizes = [16, 177], strides = [1, 1]} : vector<16x192xbf16> to vector<16x177xbf16>
    %cst_33 = arith.constant 0.000000e+00 : bf16
    %79 = vector.broadcast %cst_33 : bf16 to vector<16x15xbf16>
    %80 = tpu.concatenate %78, %79 in 1 : vector<16x177xbf16>, vector<16x15xbf16> -> vector<16x192xbf16>
    %81 = vector.extract_strided_slice %58 {offsets = [0, 16], sizes = [16, 176], strides = [1, 1]} : vector<16x192xbf16> to vector<16x176xbf16>
    %cst_34 = arith.constant 0.000000e+00 : bf16
    %82 = vector.broadcast %cst_34 : bf16 to vector<16x16xbf16>
    %83 = tpu.concatenate %81, %82 in 1 : vector<16x176xbf16>, vector<16x16xbf16> -> vector<16x192xbf16>
    %84 = vector.extract_strided_slice %62 {offsets = [0, 17], sizes = [16, 175], strides = [1, 1]} : vector<16x192xbf16> to vector<16x175xbf16>
    %cst_35 = arith.constant 0.000000e+00 : bf16
    %85 = vector.broadcast %cst_35 : bf16 to vector<16x17xbf16>
    %86 = tpu.concatenate %84, %85 in 1 : vector<16x175xbf16>, vector<16x17xbf16> -> vector<16x192xbf16>
    %87 = tpu.concatenate %65, %68, %71, %74, %58, %77, %80, %83, %86 in 0 : vector<16x192xbf16>, vector<16x192xbf16>, vector<16x192xbf16>, vector<16x192xbf16>, vector<16x192xbf16>, vector<16x192xbf16>, vector<16x192xbf16>, vector<16x192xbf16>, vector<16x192xbf16> -> vector<144x192xbf16>
    %c0_36 = arith.constant 0 : index
    %c0_37 = arith.constant 0 : index
    %88 = vector.load %arg5[%c0_36, %c0_37] : memref<4x144xbf16, #tpu.memory_space<vmem>>, vector<4x144xbf16>
    %cst_38 = arith.constant dense<0.000000e+00> : vector<4x192xf32>
    %89 = tpu.matmul %88, %87, %cst_38 {dimension_numbers = #tpu.dot_dimension_numbers<[1], [0], [0], [1], [0, 0, 1, 1], [], []>} : vector<4x144xbf16>, vector<144x192xbf16>, vector<4x192xf32> -> vector<4x192xf32>
    %c0_39 = arith.constant 0 : index
    %c0_40 = arith.constant 0 : index
    %90 = vector.load %arg6[%c0_39, %c0_40] : memref<4x1xf32, #tpu.memory_space<vmem>>, vector<4x1xf32>
    %91 = vector.broadcast %90 : vector<4x1xf32> to vector<4x192xf32>
    %92 = arith.addf %89, %91 : vector<4x192xf32>
    %cst_41 = arith.constant 0.000000e+00 : f32
    %93 = vector.broadcast %cst_41 : f32 to vector<4x192xf32>
    %94 = arith.maximumf %92, %93 : vector<4x192xf32>
    %95 = vector.extract_strided_slice %94 {offsets = [0, 32], sizes = [4, 128], strides = [1, 1]} : vector<4x192xf32> to vector<4x128xf32>
    %c0_42 = arith.constant 0 : index
    %c0_43 = arith.constant 0 : index
    %c0_44 = arith.constant 0 : index
    %96 = vector.load %arg8[%c0_42, %c0_43, %c0_44] : memref<1x4x128xf32, #tpu.memory_space<vmem>>, vector<1x4x128xf32>
    %97 = vector.shape_cast %96 : vector<1x4x128xf32> to vector<4x128xf32>
    %98 = vector.shape_cast %95 : vector<4x128xf32> to vector<1x4x128xf32>
    tpu.vector_store %arg8[%c0_42, %c0_43, %c0_44], %98 {strides = array<i32>} : memref<1x4x128xf32, #tpu.memory_space<vmem>>, vector<1x4x128xf32>,
    return
  }
  func.func @transform_0(%arg0: i32, %arg1: i32) -> (i32, i32, i32, i32) {
    %c0_i32 = arith.constant 0 : i32
    %c0_i32_0 = arith.constant 0 : i32
    %c0_i32_1 = arith.constant 0 : i32
    return %arg0, %arg1, %c0_i32, %c0_i32_0 : i32, i32, i32, i32
  }
  func.func @transform_1(%arg0: i32, %arg1: i32) -> (i32, i32) {
    %c0_i32 = arith.constant 0 : i32
    %c0_i32_0 = arith.constant 0 : i32
    %c0_i32_1 = arith.constant 0 : i32
    return %c0_i32, %c0_i32_0 : i32, i32
  }
  func.func @transform_2(%arg0: i32, %arg1: i32) -> (i32, i32) {
    %c0_i32 = arith.constant 0 : i32
    %c0_i32_0 = arith.constant 0 : i32
    %c0_i32_1 = arith.constant 0 : i32
    return %c0_i32, %c0_i32_0 : i32, i32
  }
  func.func @transform_3(%arg0: i32, %arg1: i32) -> (i32, i32) {
    %c0_i32 = arith.constant 0 : i32
    %c0_i32_0 = arith.constant 0 : i32
    %c0_i32_1 = arith.constant 0 : i32
    return %c0_i32, %c0_i32_0 : i32, i32
  }
  func.func @transform_4(%arg0: i32, %arg1: i32) -> (i32, i32) {
    %c0_i32 = arith.constant 0 : i32
    %c0_i32_0 = arith.constant 0 : i32
    %c0_i32_1 = arith.constant 0 : i32
    return %c0_i32, %c0_i32_0 : i32, i32
  }
  func.func @transform_5(%arg0: i32, %arg1: i32) -> (i32, i32, i32) {
    %c0_i32 = arith.constant 0 : i32
    %c0_i32_0 = arith.constant 0 : i32
    %c0_i32_1 = arith.constant 0 : i32
    %c0_i32_2 = arith.constant 0 : i32
    return %c0_i32, %c0_i32_0, %c0_i32_1 : i32, i32, i32
  }
  func.func @transform_6(%arg0: i32, %arg1: i32) -> (i32, i32, i32) {
    %c0_i32 = arith.constant 0 : i32
    %c0_i32_0 = arith.constant 0 : i32
    return %arg0, %c0_i32, %arg1 : i32, i32, i32
  }
}

</mosaic_0001>

<bundles_post_ra>
// kernel: tpu_custom_call.1
= control target key start
LH: loop header
LB: loop body
LE: loop exit
PB: predicated region body
PF: predicated region fallthrough
CT: control target
= control target key end

     0   :  { %s1540_s0 = inlined_call_operand.hbm [shape: bf16[2,2,16,192], index: 0, kind: input, shape index: {}]   ;;  %s1541_s1 = inlined_call_operand.vmem [shape: bf16[16,144], index: 1, kind: input, shape index: {}]   ;;  %s1542_s2 = inlined_call_operand.vmem [shape: f32[16,1], index: 2, kind: input, shape index: {}]   ;;  %s1543_s3 = inlined_call_operand.vmem [shape: bf16[4,144], index: 3, kind: input, shape index: {}]   ;;  %s1544_s4 = inlined_call_operand.vmem [shape: f32[4,1], index: 4, kind: input, shape index: {}]   ;;  %s1545_s5 = inlined_call_operand.vmem [shape: bf16[4,1,192], index: 5, kind: input, shape index: {}]   ;;  %s1546_s6 = inlined_call_operand.hbm [shape: f32[2,4,256], index: 6, kind: output, shape index: {}]  }
   0x1   :  { %1556 = sst [smem:[#allocation12_spill]] %s1546_s6 }
   0x2   :  { %11 = vsyncpa [#allocation3], 0 }
   0x3   :  { %13 = vsyncpa [#allocation3 + $0x1], 0 }
   0x4   :  { %14 = vsyncpa [#allocation4], 0 }
   0x5   :  { %16 = vsyncpa [#allocation4 + $0x1], 0  ;;  %s1211_s21 = smov 0   ;;  %s1213_s22 = smov 0  }
   0x6   :  { %s1215_s23 = smov 0   ;;  %s1217_s24 = smov 0  }
   0x7   :  { %s1219_s25 = smov 0   ;;  %s1221_s26 = smov 0  }
   0x8   :  { %s1223_s27 = smov 0   ;;  %s1225_s28 = smov 0  }
   0x9 LB: > { %1557 = sst [smem:[#allocation8_spill]] %s1131_s21  ;;  %s879_s29 = sadd.s32 4294967295, %s1159_s28   ;;  %s1159_s28 = sphi %s1225_s28, %s22_s28   ;;  %s1155_s27 = sphi %s1223_s27, %s1587_s27   ;;  %s1151_s26 = sphi %s1221_s26, %s1581_s26   ;;  %s1147_s25 = sphi %s1219_s25, %s1586_s25   ;;  %s1143_s24 = sphi %s1217_s24, %s1580_s24   ;;  %s1139_s23 = sphi %s1215_s23, %s1585_s23   ;;  %s1135_s22 = sphi %s1213_s22, %s1584_s22   ;;  %s1131_s21 = sphi %s1211_s21, %s1583_s21  }
   0xa   : > { %1558 = sst [smem:[#allocation9_spill]] %s1151_s26  ;;  %s880_s30 = sadd.s32 4294967294, %s1159_s28  }
   0xb   : > { %s31_s7 = sadd.s32 1, %s1151_s26  ;;  %s34_s8 = sadd.s32 1, %s1155_s27 }
   0xc   : > { %p32_p0 = scmp.ge.s32.totalorder %s31_s7, 2  ;;  %s43_s9 = sadd.s32 1, %s1139_s23 }
   0xd   : > { %p50_p1 = scmp.ne.s32.totalorder %s1139_s23, %s1135_s22  ;;  %p51_p2 = scmp.eq.s32.totalorder %s1159_s28, 0 }
   0xe   : > { %s1589_s7 = smov (%p32_p0, %s31_s7), 0  ;;  %s1591_s8 = smov (!%p32_p0, %s34_s8), %s1155_s27 }
   0xf   : > { %1559 = sst [smem:[#allocation10_spill]] %s1589_s7  ;;  %s39_s10 = ssub.s32 %s1151_s26, %s1589_s7 }
  0x10   : > { %p1264_p3 = por %p51_p2, %p50_p1  ;;  %p36_p4 = scmp.ge.s32.totalorder %s1591_s8, 2 }
  0x11   : > { %p56_p5 = scmp.ne.s32.totalorder %s1135_s22, %s1131_s21  ;;  %p57_p6 = scmp.eq.s32.totalorder %s879_s29, 0 }
  0x12   : > { %p187_p7 = scmp.eq.s32.totalorder %s879_s29, 3  ;;  %s1593_s8 = smov (%p36_p4, %s1591_s8), 0 }
  0x13   : > { %1561 = sst [smem:[#allocation11_spill]] %s1593_s8  ;;  %p1272_p8 = por %p57_p6, %p56_p5 }
  0x14   : > { %p1276_p9 = por %p187_p7, %p50_p1  ;;  %s38_s14 = ssub.s32 %s1155_s27, %s1593_s8 }
  0x15   : > { %p193_p10 = scmp.eq.s32.totalorder %s880_s30, 3  ;;  %s40_s15 = sor.u32 %s39_s10, %s38_s14 }
  0x16   : > { %p41_p11 = scmp.eq.s32.totalorder %s40_s15, 0  ;;  %p949_p13 = scmp.lt.s32.totalorder %s1159_s28, 4 }
  0x17   : > { %p1282_p12 = por %p193_p10, %p56_p5  ;;  %s228_s17 = sand.u32 1, %s1139_s23  }
  0x18   : > { %s1289_s18 = scalar_select %p41_p11, %s1139_s23, %s43_s9  }
  0x19   : > { %s883_s19 = sshll.u32 %s228_s17, 4  ;;  %s884_s20 = sshll.u32 %s1151_s26, 2 }
  0x1a   : > { %s885_s29 = sshll.u32 %s1155_s27, 3  ;;  %s232_s7 = scalar_lea.vmem [#allocation2], %s883_s19 }
  0x1b   : > { %s241_s21 = sshll.u32 %s232_s7, 4  ;;  %s238_s6 = sadd.s32 %s885_s29, %s884_s20  ;;  %s242_s21 = int_to_ptr.vmem [resolvable:$true] %s241_s21 }
  0x1c   : > { %s886_s8 = sshll.u32 %s238_s6, 6  ;;  %p1295_p0 = pnand %p949_p13, %p1264_p3 }
  0x1d   : > { %s240_s15 = scalar_lea.hbm %s1540_s0, %s886_s8  ;;  %s229_s9 = scalar_lea.sflag [#allocation3], %s228_s17 }
  0x1e   : > { %p1037_p1 = pneg %p1295_p0  ;;  %s1048_s26 = scalar_lea.vmem %s242_s21, 256 }
  0x1f   : > { %p1049_p2 = scmp.ne.s32.totalorder %s242_s21, %s1048_s26  ;;  %s1161_s7 = smov [#allocation2]  }
  0x20   : > { %s1053_s19 = sshll.u32 %s1161_s7, 4  ;;  %s1054_s19 = int_to_ptr.vmem [resolvable:$false] %s1053_s19 }
  0x21   : > { %p1051_p4 = pnand %p1049_p2, %p1037_p1  ;;  %s1055_s6 = scalar_lea.vmem %s1054_s19, 512 }
  0x22   : > { %p1056_p3 = scmp.lt.s32.totalorder %s242_s21, %s1054_s19  ;;  %p1057_p6 = scmp.lt.s32.totalorder %s1055_s6, %s1048_s26 }
  0x23   : > { %p1052_p5 = pneg %p1051_p4 }
  0x24   : > { %p1058_p7 = por %p1057_p6, %p1056_p3 }
  0x26   : > { %p1059_p10 = pnand %p1058_p7, %p1052_p5 }
  0x28   : > { %1062 = shalt.err (!%p1059_p10)
}
  0x29   : > { %s1162_s11 = smov 128   ;;  %s1163_s8 = smov 8  }
  0x2a   : > { %944 = dma.hbm_to_vmem [thread:$0]  (!%p1295_p0), %s240_s15, 256, %s242_s21, %s229_s9, %s1162_s11, %s1162_s11, %s1163_s8  }
  0x2b   : > { %p887_p11 = scmp.ge.s32.totalorder %s1159_s28, 1  ;;  %p249_p13 = scmp.lt.s32.totalorder %s1159_s28, 5 }
  0x2d   : > { %p250_p1 = pnand %p887_p11, %p249_p13 }
  0x2e   : > { %s1309_s17 = sand.u32 (!%p250_p1), 1, %s1135_s22  }
  0x2f   : > { %253 = sbr.rel (%p250_p1) target bundleno = 909 (0x38d), region = 44  ;;  %s888_s26 = sshll.u32 (!%p250_p1), %s1309_s17, 4 }
  0x30   : > { %s256_s20 = scalar_lea.sflag (!%p250_p1), [#allocation3], %s1309_s17  ;;  %s259_s29 = scalar_lea.vmem (!%p250_p1), [#allocation2], %s888_s26 }
  0x34   : > { %1122 = dma.done.wait (%p1272_p8), %s256_s20, 256  }
  0x35   : > { %1124 = vsyncadd (%p1272_p8), %s256_s20, 4294967040  ;;  %v312_v0 = vlaneseq  ;;  %v1164_v1 = vmov 1966171168   ;;  %v298_v7 = vld [vmem:[%s259_s29] sm:$0xff]  ;;  %v299_v8 = vld [vmem:[%s259_s29 + $0x8] sm:$0xff]  ;;  %s1165_s14 = smov 112  }
  0x36   : > { %v310_v2 = vunpack.c.l.s4 %v1164_v1  ;;  %v893_v9 = vld.sshfl [vmem:[%s1545_s5] sm:$0x11 pattern:$0x75316420]  ;;  %v1326_v10 = vcombine.low %v298_v7, %v299_v8  ;;  %v1333_v16 = vcombine.high %v298_v7, %v299_v8  ;;  %s1166_s15 = smov 113   ;;  %s1167_s9 = smov 127  }
  0x37   : > { %v1317_v3 = vshrl.u32 %v312_v0, 7  ;;  %v308_v11 = vcombine.high %v893_v9, %v893_v9  ;;  %v895_v13 = vld.sshfl [vmem:[%s1545_s5 + $0x2] sm:$0x11 pattern:$0x75316420]  ;;  %s1168_s7 = smov 1  }
  0x38   : > { %v311_v4 = vunpack.c.0.s8 %v310_v2  ;;  %v353_v14 = vcombine.high %v895_v13, %v895_v13  ;;  %481 = vrot.lane.b32.xlu0 %v1326_v10, %s1165_s14  ;;  %s1169_s19 = smov 15   ;;  %s1170_s6 = smov 16   ;;  %v1034_v37 = vld [vmem:[%s1541_s1 + $0x4] ss:$8 sps:$4 sm:$0xff]   ;;  %vm422_vm0 = vcmask 130048   ;;  %v1173_v39 = vmov 0  }
  0x39   : > { %v1321_v6 = vsub.s32 0, %v1317_v3  ;;  %s1171_s11 = smov 17   ;;  %s1172_s20 = smov 111   ;;  %917 = vmatprep.mubr.msk.bf16.mxu0 %vm422_vm0, %v1034_v37  ;;  %v507_v38 = vld [vmem:[%s1542_s2] sm:$0xff]  ;;  %1028 = vset.pattern.permute.xlu0 %v1173_v39  ;;  %v508_v40 = vld [vmem:[%s1542_s2 + $0x8] sm:$0xff]  ;;  %vm488_vm1 = vcmask 392192   ;;  %vm1407_vm12 = vmneg %vm422_vm0 }
  0x3a   : > { %v314_v5 = vsub.s32 %v311_v4, %v1317_v3  ;;  %1029 = vset.pattern.permute.xlu1 %v1173_v39  ;;  %vm485_vm2 = vcmask 916480   ;;  %vm477_vm3 = vcmask 400384   ;;  %vm474_vm4 = vcmask 924672   ;;  %p578_p8 = scmp.eq.s32.totalorder %s1143_s24, 0  ;;  %p586_p0 = scmp.eq.s32.totalorder %s1143_s24, 1 }
  0x3b   : > { %vm466_vm5 = vcmask 515072   ;;  %vm463_vm6 = vcmask 1039360   ;;  %vm452_vm7 = vcmask 7168   ;;  %vm1553_vm8 = vcmask 121856   ;;  %s1578_s12 = sld [smem:[#allocation12_spill]] }
  0x3c   : > { %v315_v12 = vrot.slane %v893_v9, %v314_v5  ;;  %v360_v15 = vrot.slane %v895_v13, %v314_v5  ;;  %v322_v17 = vrot.slane %v308_v11, %v314_v5  ;;  %v367_v19 = vrot.slane %v353_v14, %v314_v5  ;;  %483 = vrot.lane.b32.xlu0 %v1333_v16, %s1165_s14  ;;  %vm1391_vm9 = vmneg %vm452_vm7  ;;  %s579_s26 = scalar_select %p578_p8, 1, 0  ;;  %v891_v14 = vld [vmem:[%s1545_s5 + $0x4] sm:$0x3] }
  0x3d   : > { %vm1399_vm10 = vmneg %vm1553_vm8  ;;  %vm1552_vm11 = vcmask 138240   ;;  %vm1555_vm14 = vcmask 384000   ;;  %vm1554_vm15 = vcmask 908288   ;;  %s587_s29 = scalar_select %p586_p0, 1, 0 }
  0x3e   : > { %v324_v18 = vpack.i.b16 %v315_v12, %v315_v12  ;;  %v369_v20 = vpack.i.b16 %v360_v15, %v360_v15  ;;  %v331_v22 = vpack.i.b16 %v322_v17, %v322_v17  ;;  %v376_v24 = vpack.i.b16 %v367_v19, %v367_v19  ;;  %vm1415_vm13 = vmneg %vm1552_vm11  ;;  %v892_v15 = vld [vmem:[%s1545_s5 + $0x6] sm:$0x3] }
  0x3f   : > { %v588_v9 = vstv %s587_s29 }
  0x40   : > { %v1336_v21 = vrot.slane %v324_v18, %v1321_v6  ;;  %v1339_v23 = vrot.slane %v369_v20, %v1321_v6  ;;  %v1344_v25 = vrot.slane %v331_v22, %v1321_v6  ;;  %v1347_v26 = vrot.slane %v376_v24, %v1321_v6 }
  0x41   : > { %v604_v24 = vsub.s32 2, %v1317_v3 }
  0x42   : > { %v894_v27 = vcombine.low %v1336_v21, %v1344_v25  ;;  %v896_v28 = vcombine.low %v1339_v23, %v1347_v26 }
  0x44   : > { %v343_v29 = vmul.bf16 %v894_v27, %v298_v7  ;;  %v344_v30 = vmul.bf16 %v894_v27, %v299_v8  ;;  %v388_v31 = vmul.bf16 %v896_v28, %v298_v7  ;;  %v389_v32 = vmul.bf16 %v896_v28, %v299_v8  ;;  %v1032_v7 = vld [vmem:[%s1541_s1] ss:$8 sps:$4 sm:$0xff]  }
  0x45   : > { %v580_v8 = vstv %s579_s26 }
  0x46   : > { %v897_v33 = vcombine.low %v343_v29, %v344_v30  ;;  %v901_v34 = vcombine.low %v388_v31, %v389_v32  ;;  %v898_v35 = vcombine.high %v343_v29, %v344_v30  ;;  %v902_v36 = vcombine.high %v388_v31, %v389_v32 }
  0x48   : > { %470 = vrot.lane.b32.xlu1 %v897_v33, %s1166_s15  ;;  %459 = vrot.lane.b32.xlu0 %v901_v34, %s1167_s9 }
  0x4c   : > { %472 = vrot.lane.b32.xlu1 %v898_v35, %s1166_s15  ;;  %448 = vrot.lane.b32.xlu0 %v897_v33, %s1168_s7 }
  0x50   : > { %461 = vrot.lane.b32.xlu1 %v902_v36, %s1167_s9  ;;  %437 = vrot.lane.b32.xlu0 %v901_v34, %s1169_s19 }
  0x54   : > { %450 = vrot.lane.b32.xlu1 %v898_v35, %s1168_s7  ;;  %418 = vrot.lane.b32.xlu0 %v1326_v10, %s1170_s6 }
  0x58   : > { %439 = vrot.lane.b32.xlu1 %v902_v36, %s1169_s19  ;;  %398 = vrot.lane.b32.xlu0 %v897_v33, %s1171_s11 }
  0x5c   : > { %420 = vrot.lane.b32.xlu1 %v1333_v16, %s1170_s6  ;;  %492 = vrot.lane.b32.xlu0 %v901_v34, %s1172_s20 }
  0x60   : > { %400 = vrot.lane.b32.xlu1 %v898_v35, %s1171_s11  ;;  %511 = vperm.xlu0 %1028, %v507_v38  }
  0x64   : > { %494 = vrot.lane.b32.xlu1 %v902_v36, %s1172_s20 }
  0x68   : > { %516 = vperm.xlu1 %1029, %v508_v40  }
  0xaa   : > { %v482_v41 = vpop.permute.xlu0 %481 }
  0xae   : > { %v484_v42 = vpop.permute.xlu0 %483 }
  0xaf   : > { %905 = vmatprep.subr.msk.bf16.mxu0 %vm488_vm1, %v484_v42  ;;  %v486_v43 = vsel %vm485_vm2, %v482_v41, %v484_v42 }
  0xb0   : > { %532 = vmatpush1.bf16.msra.mxu0 %v486_v43 }
  0xba   : > { %v471_v44 = vpop.permute.xlu1 %470  ;;  %v460_v45 = vpop.permute.xlu0 %459 }
  0xbe   : > { %v473_v46 = vpop.permute.xlu1 %472  ;;  %v449_v48 = vpop.permute.xlu0 %448 }
  0xbf   : > { %906 = vmatprep.subr.msk.bf16.mxu0 %vm477_vm3, %v473_v46  ;;  %v475_v47 = vsel %vm474_vm4, %v471_v44, %v473_v46 }
  0xc0   : > { %534 = vmatpush1.bf16.msra.mxu0 %v475_v47 }
  0xc2   : > { %v462_v49 = vpop.permute.xlu1 %461  ;;  %v438_v51 = vpop.permute.xlu0 %437 }
  0xc3   : > { %907 = vmatprep.subr.msk.bf16.mxu0 %vm466_vm5, %v462_v49  ;;  %v464_v50 = vsel %vm463_vm6, %v460_v45, %v462_v49 }
  0xc4   : > { %536 = vmatpush1.bf16.msra.mxu0 %v464_v50 }
  0xc5   : > { %537 = vmatprep.subr.bf16.mxu0 %v1333_v16 }
  0xc6   : > { %v451_v52 = vpop.permute.xlu1 %450  ;;  %v419_v56 = vpop.permute.xlu0 %418 }
  0xc7   : > { %v453_v53 = vsel %vm452_vm7, %v449_v48, %v451_v52 }
  0xc8   : > { %538 = vmatpush1.bf16.msra.mxu0 %v1326_v10 }
  0xc9   : > { %539 = vmatprep.subr.bf16.mxu0 %v453_v53 }
  0xca   : > { %v440_v55 = vpop.permute.xlu1 %439  ;;  %v399_v61 = vpop.permute.xlu0 %398 }
  0xcb   : > { %v442_v57 = vsel %vm1553_vm8, %v438_v51, %v440_v55  ;;  %vm589_vm8 = vcmp.eq.s32.totalorder %v588_v9, 1 }
  0xcc   : > { %909 = vmatpush1.bf16.msk.msra.mxu0 %vm1391_vm9, %v449_v48  ;;  %v590_v11 = vsel %vm589_vm8, 1, %v1173_v39 }
  0xcd   : > { %541 = vmatprep.subr.bf16.mxu0 %v442_v57  ;;  %v591_v13 = vpack.c.b16 %v590_v11, %v590_v11 }
  0xce   : > { %v421_v59 = vpop.permute.xlu1 %420  ;;  %v493_v2 = vpop.permute.xlu0 %492 }
  0xcf   : > { %v423_v60 = vsel %vm422_vm0, %v419_v56, %v421_v59 }
  0xd0   : > { %911 = vmatpush1.bf16.msk.msra.mxu0 %vm1399_vm10, %v438_v51 }
  0xd1   : > { %543 = vmatprep.subr.bf16.mxu0 %v423_v60 }
  0xd2   : > { %v401_v63 = vpop.permute.xlu1 %400 }
  0xd3   : > { %v403_v0 = vsel %vm1552_vm11, %v399_v61, %v401_v63  ;;  %vm581_vm11 = vcmp.eq.s32.totalorder %v580_v8, 1 }
  0xd4   : > { %913 = vmatpush1.bf16.msk.msra.mxu0 %vm1407_vm12, %v419_v56  ;;  %v582_v10 = vsel %vm581_vm11, 1, %v1173_v39 }
  0xd5   : > { %545 = vmatprep.subr.bf16.mxu0 %v403_v0  ;;  %v583_v12 = vpack.c.b16 %v582_v10, %v582_v10 }
  0xd6   : > { %v495_v4 = vpop.permute.xlu1 %494 }
  0xd7   : > { %v497_v5 = vsel %vm1554_vm15, %v493_v2, %v495_v4  ;;  %vm584_vm15 = vcmp.ne.s16.totalorder %v583_v12, 0 }
  0xd8   : > { %915 = vmatpush1.bf16.msk.msra.mxu0 %vm1415_vm13, %v399_v61  ;;  %v585_v16 = vsel %vm584_vm15, %v891_v14, 0 }
  0xd9   : > { %916 = vmatprep.subr.msk.bf16.mxu0 %vm1555_vm14, %v495_v4  ;;  %vm592_vm14 = vcmp.ne.s16.totalorder %v591_v13, 0 }
  0xda   : > { %v593_v17 = vsel %vm592_vm14, %v892_v15, 0 }
  0xdb   : > { %v594_v18 = vadd.bf16 %v593_v17, %v585_v16  ;;  %v512_v22 = vpop.permute.xlu0 %511 }
  0xdc   : > { %562 = vmatpush2.bf16.msra.mxu0 %v497_v5 }
  0xdd   : > { %v595_v19 = vsub.bf16 1065369472, %v594_v18 }
  0xdf   : > { %564 = vmatmul.mubr.bf16.vlgmr.msra.gmra.mxu0 %v1032_v7  ;;  %v596_v20 = vunpack.c.l.bf16 %v595_v19 }
  0xe1   : > { %v601_v29 = vrot.slane %v596_v20, %v1321_v6  ;;  %v605_v33 = vrot.slane %v596_v20, %v604_v24 }
  0xe3   : > { %v517_v31 = vpop.permute.xlu1 %516  ;;  %v611_v36 = vrot.slane %v601_v29, %v1321_v6  ;;  %v615_v40 = vrot.slane %v605_v33, %v1321_v6 }
 0x19f   : > { %v565_v27 = vpop.f32.mrf.mxu0 }
 0x1a0   : > { %v566_v28 = vadd.f32 %v565_v27, %v512_v22 }
 0x1a1   : > { %v567_v30 = vpop.f32.mrf.mxu0 }
 0x1a2   : > { %v568_v32 = vadd.f32 %v567_v30, %v512_v22  ;;  %v574_v35 = vmax.f32 %v566_v28, 0.0 }
 0x1a3   : > { %v569_v34 = vpop.f32.mrf.mxu0 }
 0x1a4   : > { %v570_v37 = vadd.f32 %v569_v34, %v517_v31  ;;  %v575_v39 = vmax.f32 %v568_v32, 0.0  ;;  %v616_v3 = vmul.f32 %v611_v36, %v574_v35 }
 0x1a5   : > { %v571_v38 = vpop.f32.mrf.mxu0 }
 0x1a6   : > { %v576_v41 = vmax.f32 %v570_v37, 0.0  ;;  %v572_v42 = vadd.f32 %v571_v38, %v517_v31  ;;  %v617_v45 = vmul.f32 %v615_v40, %v575_v39 }
 0x1a8   : > { %v618_v43 = vmul.f32 %v611_v36, %v576_v41  ;;  %v577_v44 = vmax.f32 %v572_v42, 0.0 }
 0x1aa   : > { %v620_v46 = vpack.c.bf16 %v618_v43, %v616_v3  ;;  %v619_v47 = vmul.f32 %v615_v40, %v577_v44 }
 0x1ac   : > { %v621_v48 = vpack.c.bf16 %v619_v47, %v617_v45  ;;  %686 = vrot.lane.b32.xlu1 %v620_v46, %s1165_s14  ;;  %v622_v49 = vmul.bf16 %v620_v46, %v1336_v21  ;;  %v624_v6 = vmul.bf16 %v620_v46, %v1339_v23  ;;  %v918_v21 = vld.sshfl [vmem:[%s1543_s3] sm:$0x33 pattern:$0x76325410] }
 0x1ad   : > { %v719_v23 = vcombine.high %v918_v21, %v918_v21 }
 0x1ae   : > { %688 = vrot.lane.b32.xlu0 %v621_v48, %s1165_s14  ;;  %v623_v50 = vmul.bf16 %v621_v48, %v1344_v25  ;;  %v625_v51 = vmul.bf16 %v621_v48, %v1347_v26  ;;  %v705_v25 = vld [vmem:[%s1544_s4] sm:$0xf]  ;;  %s778_s14 = scalar_lea.sflag [#allocation4], %s1309_s17 }
 0x1af   : > { %931 = vmatprep.mubr.msk.bf16.mxu1 %vm422_vm0, %v719_v23 }
 0x1b0   : > { %677 = vrot.lane.b32.xlu1 %v622_v49, %s1166_s15 }
 0x1b2   : > { %679 = vrot.lane.b32.xlu0 %v623_v50, %s1166_s15 }
 0x1b4   : > { %668 = vrot.lane.b32.xlu1 %v624_v6, %s1167_s9 }
 0x1b6   : > { %670 = vrot.lane.b32.xlu0 %v625_v51, %s1167_s9 }
 0x1b8   : > { %659 = vrot.lane.b32.xlu1 %v622_v49, %s1168_s7 }
 0x1ba   : > { %661 = vrot.lane.b32.xlu0 %v623_v50, %s1168_s7 }
 0x1bc   : > { %650 = vrot.lane.b32.xlu1 %v624_v6, %s1169_s19 }
 0x1be   : > { %652 = vrot.lane.b32.xlu0 %v625_v51, %s1169_s19  ;;  %s1174_s19 = smov 96  }
 0x1c0   : > { %639 = vrot.lane.b32.xlu1 %v620_v46, %s1170_s6 }
 0x1c2   : > { %641 = vrot.lane.b32.xlu0 %v621_v48, %s1170_s6  ;;  %s889_s6 = sshll.u32 %s1309_s17, 2 }
 0x1c3   : > { %s287_s26 = scalar_lea.vmem [#allocation5], %s889_s6 }
 0x1c4   : > { %628 = vrot.lane.b32.xlu1 %v622_v49, %s1171_s11  ;;  %s793_s29 = sshll.u32 %s287_s26, 4  ;;  %s794_s29 = int_to_ptr.vmem [resolvable:$true] %s793_s29 }
 0x1c5   : > { %s1063_s15 = scalar_lea.vmem %s794_s29, 64 }
 0x1c6   : > { %630 = vrot.lane.b32.xlu0 %v623_v50, %s1171_s11  ;;  %s933_s11 = sshll.u32 %s1147_s25, 1  ;;  %p1064_p2 = scmp.ne.s32.totalorder %s794_s29, %s1063_s15 }
 0x1c8   : > { %695 = vrot.lane.b32.xlu1 %v624_v6, %s1172_s20  ;;  %p1065_p4 = pnand %p1064_p2, %p1276_p9 }
 0x1ca   : > { %697 = vrot.lane.b32.xlu0 %v625_v51, %s1172_s20  ;;  %s789_s20 = sadd.s32 %s1143_s24, %s933_s11  ;;  %p1066_p5 = pneg %p1065_p4 }
 0x1cb   : > { %s934_s8 = sshll.u32 %s789_s20, 6  ;;  %s1175_s24 = smov [#allocation5]  }
 0x1cc   : > { %708 = vperm.xlu1 %1029, %v705_v25   ;;  %s1493_s10 = scalar_lea.hbm %s1578_s12, %s934_s8  ;;  %s1067_s25 = sshll.u32 %s1175_s24, 4  ;;  %s1068_s25 = int_to_ptr.vmem [resolvable:$false] %s1067_s25 }
 0x1cd   : > { %s1069_s9 = scalar_lea.vmem %s1068_s25, 128  ;;  %p1070_p3 = scmp.lt.s32.totalorder %s794_s29, %s1068_s25 }
 0x1ce   : > { %p1071_p6 = scmp.lt.s32.totalorder %s1069_s9, %s1063_s15 }
 0x1d0   : > { %p1072_p7 = por %p1071_p6, %p1070_p3 }
 0x1d2   : > { %p1073_p10 = pnand %p1072_p7, %p1066_p5 }
 0x21e   : > { %v687_v26 = vpop.permute.xlu1 %686 }
 0x220   : > { %v689_v52 = vpop.permute.xlu0 %688 }
 0x221   : > { %919 = vmatprep.subr.msk.bf16.mxu1 %vm488_vm1, %v689_v52  ;;  %v690_v53 = vsel %vm485_vm2, %v687_v26, %v689_v52  ;;  %vm1574_vm1 = vcmask 121856   ;;  %vm1575_vm2 = vcmask 138240  }
 0x222   : > { %725 = vmatpush1.bf16.msra.mxu1 %v690_v53  ;;  %v678_v55 = vpop.permute.xlu1 %677 }
 0x224   : > { %v680_v56 = vpop.permute.xlu0 %679 }
 0x225   : > { %920 = vmatprep.subr.msk.bf16.mxu1 %vm477_vm3, %v680_v56  ;;  %v681_v57 = vsel %vm474_vm4, %v678_v55, %v680_v56  ;;  %vm1576_vm3 = vcmask 384000   ;;  %vm773_vm4 = vcmask 785408  }
 0x226   : > { %727 = vmatpush1.bf16.msra.mxu1 %v681_v57  ;;  %v669_v59 = vpop.permute.xlu1 %668 }
 0x228   : > { %v671_v60 = vpop.permute.xlu0 %670 }
 0x229   : > { %921 = vmatprep.subr.msk.bf16.mxu1 %vm466_vm5, %v671_v60  ;;  %v672_v61 = vsel %vm463_vm6, %v669_v59, %v671_v60 }
 0x22a   : > { %729 = vmatpush1.bf16.msra.mxu1 %v672_v61  ;;  %v660_v63 = vpop.permute.xlu1 %659 }
 0x22b   : > { %730 = vmatprep.subr.bf16.mxu1 %v621_v48 }
 0x22c   : > { %v662_v0 = vpop.permute.xlu0 %661 }
 0x22d   : > { %v663_v2 = vsel %vm452_vm7, %v660_v63, %v662_v0 }
 0x22e   : > { %731 = vmatpush1.bf16.msra.mxu1 %v620_v46  ;;  %v651_v4 = vpop.permute.xlu1 %650 }
 0x22f   : > { %732 = vmatprep.subr.bf16.mxu1 %v663_v2 }
 0x230   : > { %v653_v5 = vpop.permute.xlu0 %652 }
 0x231   : > { %v654_v7 = vsel %vm1574_vm1, %v651_v4, %v653_v5 }
 0x232   : > { %923 = vmatpush1.bf16.msk.msra.mxu1 %vm1391_vm9, %v660_v63  ;;  %v640_v8 = vpop.permute.xlu1 %639 }
 0x233   : > { %734 = vmatprep.subr.bf16.mxu1 %v654_v7 }
 0x234   : > { %v642_v9 = vpop.permute.xlu0 %641 }
 0x235   : > { %v643_v10 = vsel %vm422_vm0, %v640_v8, %v642_v9  ;;  %vm1577_vm0 = vcmask 908288  }
 0x236   : > { %925 = vmatpush1.bf16.msk.msra.mxu1 %vm1399_vm10, %v651_v4  ;;  %v629_v11 = vpop.permute.xlu1 %628 }
 0x237   : > { %736 = vmatprep.subr.bf16.mxu1 %v643_v10 }
 0x238   : > { %v631_v12 = vpop.permute.xlu0 %630 }
 0x239   : > { %v632_v13 = vsel %vm1575_vm2, %v629_v11, %v631_v12 }
 0x23a   : > { %927 = vmatpush1.bf16.msk.msra.mxu1 %vm1407_vm12, %v640_v8  ;;  %v696_v54 = vpop.permute.xlu1 %695 }
 0x23b   : > { %738 = vmatprep.subr.bf16.mxu1 %v632_v13 }
 0x23c   : > { %v698_v14 = vpop.permute.xlu0 %697 }
 0x23d   : > { %v699_v58 = vsel %vm1577_vm0, %v696_v54, %v698_v14 }
 0x23e   : > { %929 = vmatpush1.bf16.msk.msra.mxu1 %vm1415_vm13, %v629_v11 }
 0x23f   : > { %930 = vmatprep.subr.msk.bf16.mxu1 %vm1576_vm3, %v698_v14 }
 0x242   : > { %755 = vmatpush2.bf16.msra.mxu1 %v699_v58 }
 0x245   : > { %757 = vmatmul.mubr.bf16.vlgmr.msra.gmra.mxu1 %v918_v21 }
 0x247   : > { %v709_v15 = vpop.permute.xlu1 %708 }
 0x305   : > { %v758_v16 = vpop.f32.mrf.mxu1 }
 0x306   : > { %v759_v17 = vadd.f32 %v758_v16, %v709_v15 }
 0x307   : > { %v760_v62 = vpop.f32.mrf.mxu1 }
 0x308   : > { %v765_v18 = vmax.f32 %v759_v17, 0.0  ;;  %v761_v19 = vadd.f32 %v760_v62, %v709_v15 }
 0x309   : > { %v762_v20 = vpop.f32.mrf.mxu1 }
 0x30a   : > { %v766_v22 = vmax.f32 %v761_v19, 0.0  ;;  %769 = vrot.lane.b32.xlu0 %v765_v18, %s1174_s19 }
 0x30b   : > { %v763_v1 = vpop.f32.mrf.mxu1 }
 0x30c   : > { %771 = vrot.lane.b32.xlu1 %v766_v22, %s1174_s19 }
 0x37c   : > { %v770_v24 = vpop.permute.xlu0 %769 }
 0x37e   : > { %v772_v27 = vpop.permute.xlu1 %771 }
 0x37f   : > { %v774_v28 = vsel %vm773_vm4, %v770_v24, %v772_v27 }
 0x380   : > { %776 = vst [vmem:[%s287_s26] sm:$0xf] %v774_v28 }
 0x381   : > { %1076 = shalt.err (!%p1073_p10)
}
 0x382   : > { %s1077_s7 = scalar_lea.hbm %s1493_s10, 64  ;;  %s1081_s6 = scalar_lea.hbm %s1578_s12, 256 }
 0x383   : > { %p1078_p11 = scmp.ne.s32.totalorder %s1493_s10, %s1077_s7  ;;  %p1082_p8 = scmp.lt.s32.totalorder %s1493_s10, %s1578_s12 }
 0x384   : > { %p1083_p0 = scmp.lt.s32.totalorder %s1081_s6, %s1077_s7 }
 0x385   : > { %p1079_p13 = pnand %p1078_p11, %p1276_p9 }
 0x386   : > { %p1084_p2 = por %p1083_p0, %p1082_p8 }
 0x387   : > { %p1080_p1 = pneg %p1079_p13 }
 0x389   : > { %p1085_p4 = pnand %p1084_p2, %p1080_p1 }
 0x38b   : > { %1088 = shalt.err (!%p1085_p4)
}
 0x38c   : > { %939 = dma.vmem_to_hbm [thread:$0]  (%p1276_p9), %s794_s29, 64, %s1493_s10, %s778_s14  }
 0x38d PF: > { %s1579_s8 = sld [smem:[#allocation8_spill]]  ;;  %p950_p5 = scmp.ge.s32.totalorder %s1159_s28, 2 }
 0x38f   : > { %p946_p3 = pnand %p950_p5, %p1282_p12 }
 0x391   : > { %p947_p6 = pneg %p946_p3 }
 0x393   : > { %s805_s26 = sand.u32 1, %s1579_s8  }
 0x394   : > { %s806_s21 = scalar_lea.sflag [#allocation4], %s805_s26 }
 0x395   : > { %1126 = dma.done.wait (%p947_p6), %s806_s21, 64  }
 0x396   : > { %1128 = vsyncadd (%p947_p6), %s806_s21, 4294967232  ;;  %s22_s28 = sadd.s32 1, %s1159_s28   ;;  %s1580_s24 = sld [smem:[#allocation9_spill]] }
 0x397   : > { %p19_p7 = scmp.ge.s32.totalorder %s22_s28, 6   ;;  %s1581_s26 = sld [smem:[#allocation10_spill]] }
 0x398   : > { %s1582_s13 = sld [smem:[#allocation11_spill]]  ;;  %s1583_s21 = smov %s1135_s22 }
 0x399   : > { %s1584_s22 = smov %s1139_s23  ;;  %s1585_s23 = smov %s1289_s18 }
 0x39a   : > { %s1586_s25 = smov %s1155_s27  ;;  %21 = sbr.rel (!%p19_p7) target bundleno = 9 (0x9), region = 92 }
 0x39e   : > { %s1587_s27 = smov %s1582_s13 }
 0x39f   :  { %811 = vsyncpa [#allocation3], 1 }
 0x3a0   :  { %813 = vsyncpa [#allocation3 + $0x1], 1 }
 0x3a1   :  { %814 = vsyncpa [#allocation4], 1 }
 0x3a2   :  { %816 = vsyncpa [#allocation4 + $0x1], 1 }

</bundles_post_ra>
